<compile_context>
chip_gen: v5e
topology: v5e:2x2
jax: 0.10.0
libtpu: 0.0.40
codegen_flags: <defaults>
</compile_context>

<pallas_src>
import math

import jax
import jax.numpy as jnp
from jax import lax
from jax.experimental import pallas as pl
from jax.experimental.pallas import tpu as pltpu

_EPS = 1e-12  # F.normalize default eps


def make_arc_margin_kernel(s: float, m: float, easy_margin: bool, ls_eps: float,
                           out_features: int, tile_c: int):
    cos_m = math.cos(m)
    sin_m = math.sin(m)
    th = math.cos(math.pi - m)
    mm = math.sin(math.pi - m) * m

    def kernel(xn_ref, wt_ref, label_ref, o_ref, wn_ref):
        c_idx = pl.program_id(0)   # C (weight) axis: outer / slow
        b_idx = pl.program_id(1)   # B axis: inner / fast ("arbitrary" -> sequential)

        # Normalize + cast the weight tile once per C tile; reuse for all B steps.
        @pl.when(b_idx == 0)
        def _():
            w = wt_ref[...].astype(jnp.float32)                          # (D, tC)
            inv = lax.rsqrt(jnp.maximum(jnp.sum(w * w, axis=0, keepdims=True),
                                        _EPS * _EPS))                    # (1, tC)
            wn_ref[...] = (w * inv).astype(wn_ref.dtype)

        # MXU-native contraction: (tB, D) x (D, tC) -> (tB, tC), f32 accumulate.
        cosine = jnp.dot(xn_ref[...], wn_ref[...],
                         preferred_element_type=jnp.float32)

        # Clamp so |cosine| > 1 by a ULP cannot NaN the sqrt.
        sine = jnp.sqrt(jnp.maximum(0.0, 1.0 - cosine * cosine))
        phi = cosine * cos_m - sine * sin_m
        if easy_margin:
            phi = jnp.where(cosine > 0.0, phi, cosine)
        else:
            phi = jnp.where(cosine > th, phi, cosine - mm)

        # one_hot via iota-compare against the tile-local label
        # (a (tB,1) subtraction instead of a full (tB,tC) offset add).
        local_label = label_ref[...] - c_idx * tile_c                    # (tB, 1)
        is_target = lax.broadcasted_iota(jnp.int32, cosine.shape, 1) == local_label

        if ls_eps > 0:
            on_val = 1.0 - ls_eps + ls_eps / out_features
            off_val = ls_eps / out_features
            oh = jnp.where(is_target, on_val, off_val)
            out = cosine + oh * (phi - cosine)
        else:
            out = jnp.where(is_target, phi, cosine)
        o_ref[...] = (out * s).astype(o_ref.dtype)

    return kernel


def arc_margin_product(x, weight, label, *, s, m, easy_margin, ls_eps,
                       tile_b: int = 256, tile_c: int = 512,
                       matmul_dtype=jnp.bfloat16, out_dtype=jnp.float32,
                       vmem_limit_bytes=None, weight_buffers: int = 2):
    """x: (B, D), weight: (C, D), label: (B,) int -> (B, C) out_dtype.

    Per-generation tuning (perf review):
      * v5e : tile_b=128, tile_c=512 (16 MiB scoped-VMEM default).
      * v6e : tile_b=256, tile_c=1024..2048 with vmem_limit_bytes=64<<20.
      * v7x : tile_b=256, tile_c<=1024 (64 MiB physical VMEM); megacore split is
              pinned to the C axis via dimension_semantics.
      * Pass weight already in bf16 and/or out_dtype=bf16 to halve the weight /
        output HBM streams when the downstream loss tolerates it.
    """
    B, D = x.shape
    C, _ = weight.shape
    tB = min(tile_b, B)
    tC = min(tile_c, C)

    # Normalize x once (f32 math) and cast to the matmul dtype; x is re-streamed
    # across C tiles, so doing this in-kernel would repeat it C/tC times.
    xf = x.astype(jnp.float32)
    xn = (xf * lax.rsqrt(jnp.maximum(jnp.sum(xf * xf, axis=1, keepdims=True),
                                     _EPS * _EPS))).astype(matmul_dtype)

    # Pre-transpose the weight once (wrapper-side XLA) so kernel tiles are the
    # MXU-native (D, tC) layout; per-tile normalization stays inside the kernel.
    wt = weight.T                                    # (D, C)
    label2d = label.reshape(B, 1).astype(jnp.int32)

    kernel = make_arc_margin_kernel(s, m, easy_margin, ls_eps, C, tC)

    w_index_map = lambda c, b: (0, c)
    w_spec = pl.BlockSpec((D, tC), w_index_map)
    if weight_buffers != 2 and hasattr(pl, "Buffered"):
        # Deeper buffering hides the next C tile's weight DMA behind more than one
        # inner B step; fall back silently if this JAX build rejects the kwarg.
        try:
            w_spec = pl.BlockSpec((D, tC), w_index_map,
                                  pipeline_mode=pl.Buffered(weight_buffers))
        except TypeError:
            w_spec = pl.BlockSpec((D, tC), w_index_map)

    cp_kwargs = dict(dimension_semantics=("parallel", "arbitrary"))
    if vmem_limit_bytes is not None:
        cp_kwargs["vmem_limit_bytes"] = vmem_limit_bytes

    # Grid: C outer (weight-stationary, 1 weight DMA per C tile), B inner.
    grid = (pl.cdiv(C, tC), pl.cdiv(B, tB))
    return pl.pallas_call(
        kernel,
        out_shape=jax.ShapeDtypeStruct((B, C), out_dtype),
        grid_spec=pltpu.PrefetchScalarGridSpec(
            num_scalar_prefetch=0,
            grid=grid,
            in_specs=[
                pl.BlockSpec((tB, D), lambda c, b: (b, 0)),   # xn (matmul_dtype)
                w_spec,                                        # weight.T tile
                pl.BlockSpec((tB, 1), lambda c, b: (b, 0)),    # label
            ],
            out_specs=pl.BlockSpec((tB, tC), lambda c, b: (b, c)),
            scratch_shapes=[pltpu.VMEM((D, tC), matmul_dtype)],  # cached normalized W
        ),
        compiler_params=pltpu.CompilerParams(**cp_kwargs),
    )(xn, wt, label2d)


def reference_arc_margin(x, weight, label, *, s, m, easy_margin, ls_eps,
                         matmul_dtype=jnp.float32):
    """Pure-JAX reference mirroring the PyTorch forward (matmul dtype selectable)."""
    eps = 1e-12
    xn = x / jnp.maximum(jnp.linalg.norm(x, axis=1, keepdims=True), eps)
    wn = weight / jnp.maximum(jnp.linalg.norm(weight, axis=1, keepdims=True), eps)
    cosine = jnp.dot(xn.astype(matmul_dtype), wn.astype(matmul_dtype).T,
                     preferred_element_type=jnp.float32,
                     precision=jax.lax.Precision.HIGHEST)
    sine = jnp.sqrt(jnp.maximum(0.0, 1.0 - cosine ** 2))
    phi = cosine * math.cos(m) - sine * math.sin(m)
    if easy_margin:
        phi = jnp.where(cosine > 0, phi, cosine)
    else:
        phi = jnp.where(cosine > math.cos(math.pi - m), phi,
                        cosine - math.sin(math.pi - m) * m)
    one_hot = jax.nn.one_hot(label, weight.shape[0], dtype=jnp.float32)
    if ls_eps > 0:
        one_hot = (1 - ls_eps) * one_hot + ls_eps / weight.shape[0]
    return (one_hot * phi + (1.0 - one_hot) * cosine) * s


def _xavier_uniform(key, out_features, in_features):
    bound = math.sqrt(6.0 / (in_features + out_features))
    return jax.random.uniform(key, (out_features, in_features),
                              minval=-bound, maxval=bound, dtype=jnp.float32)


if __name__ == "__main__":
    s, m, easy_margin, ls_eps = 30.0, 0.5, False, 0.1
    key = jax.random.PRNGKey(0)

    # --- Test 1: tiny shapes, single tile, f32 matmul path, tight check ------
    B1, D1, C1 = 8, 32, 16
    k1, k2, k3, key = jax.random.split(key, 4)
    w1 = _xavier_uniform(k2, C1, D1)
    x1 = jax.random.normal(k1, (B1, D1), dtype=jnp.float32)
    l1 = jax.random.randint(k3, (B1,), 0, C1, dtype=jnp.int32)

    out1 = arc_margin_product(x1, w1, l1, s=s, m=m, easy_margin=easy_margin,
                              ls_eps=ls_eps, matmul_dtype=jnp.float32)
    out1 = jax.block_until_ready(out1)
    ref1 = reference_arc_margin(x1, w1, l1, s=s, m=m, easy_margin=easy_margin,
                                ls_eps=ls_eps, matmul_dtype=jnp.float32)
    assert out1.shape == (B1, C1)
    assert jnp.allclose(out1, ref1, atol=1e-3, rtol=1e-3), "f32 mismatch vs reference"

    # --- Test 2: 2x2 grid (exercises the cached normalized-weight scratch on
    # the b > 0 steps) + bf16 MXU path ----------------------------------------
    B2, D2, C2 = 16, 64, 256
    k1, k2, k3, key = jax.random.split(key, 4)
    w2 = _xavier_uniform(k2, C2, D2)
    x2 = jax.random.normal(k1, (B2, D2), dtype=jnp.float32)
    l2 = jax.random.randint(k3, (B2,), 0, C2, dtype=jnp.int32)

    out2 = arc_margin_product(x2, w2, l2, s=s, m=m, easy_margin=easy_margin,
                              ls_eps=ls_eps, tile_b=8, tile_c=128,
                              matmul_dtype=jnp.bfloat16)
    out2 = jax.block_until_ready(out2)
    ref2 = reference_arc_margin(x2, w2, l2, s=s, m=m, easy_margin=easy_margin,
                                ls_eps=ls_eps, matmul_dtype=jnp.bfloat16)
    assert out2.shape == (B2, C2)
    assert jnp.allclose(out2, ref2, atol=2e-2, rtol=2e-2), "bf16 mismatch vs reference"

    # --- Test 3: non-divisible B and C exercise the partial-block (masked
    # writeback) path flagged by the review; easy_margin / ls_eps=0 branch ----
    B3, D3, C3 = 12, 40, 200
    k1, k2, k3, key = jax.random.split(key, 4)
    w3 = _xavier_uniform(k2, C3, D3)
    x3 = jax.random.normal(k1, (B3, D3), dtype=jnp.float32)
    l3 = jax.random.randint(k3, (B3,), 0, C3, dtype=jnp.int32)

    out3 = arc_margin_product(x3, w3, l3, s=s, m=m, easy_margin=True,
                              ls_eps=0.0, tile_b=8, tile_c=128,
                              matmul_dtype=jnp.float32)
    out3 = jax.block_until_ready(out3)
    ref3 = reference_arc_margin(x3, w3, l3, s=s, m=m, easy_margin=True,
                                ls_eps=0.0, matmul_dtype=jnp.float32)
    assert out3.shape == (B3, C3)
    assert jnp.allclose(out3, ref3, atol=1e-3, rtol=1e-3), "partial-tile mismatch vs reference"

    print("KERNEL_OK")
</pallas_src>

<mosaic_0001>
module attributes {stable_mosaic.version = 11 : i64} {
  func.func @kernel(%arg0: i32, %arg1: i32, %arg2: memref<8x32xf32, #tpu.memory_space<vmem>>, %arg3: memref<32x16xf32, #tpu.memory_space<vmem>>, %arg4: memref<8x1xi32, #tpu.memory_space<vmem>>, %arg5: memref<8x16xf32, #tpu.memory_space<vmem>>, %arg6: memref<32x16xf32, #tpu.memory_space<vmem>>) attributes {dimension_semantics = [#tpu.dimension_semantics<parallel>, #tpu.dimension_semantics<arbitrary>], iteration_bounds = array<i64: 1, 1>, scalar_prefetch = 0 : i64, scratch_operands = 1 : i64, tpu.core_type = #tpu.core_type<tc>, window_params = [{transform_indices = @transform_0, window_bounds = array<i64: 8, 32>}, {transform_indices = @transform_1, window_bounds = array<i64: 32, 16>}, {transform_indices = @transform_2, window_bounds = array<i64: 8, 1>}, {transform_indices = @transform_3, window_bounds = array<i64: 8, 16>}]} {
    %c0_i32 = arith.constant 0 : i32
    %0 = arith.cmpi eq, %arg1, %c0_i32 : i32
    %1 = arith.extui %0 : i1 to i32
    %c0_i32_0 = arith.constant 0 : i32
    %2 = arith.cmpi ne, %1, %c0_i32_0 : i32
    scf.if %2 {
      %c0_17 = arith.constant 0 : index
      %c0_18 = arith.constant 0 : index
      %38 = vector.load %arg3[%c0_17, %c0_18] : memref<32x16xf32, #tpu.memory_space<vmem>>, vector<32x16xf32>
      %39 = arith.mulf %38, %38 : vector<32x16xf32>
      %cst_19 = arith.constant dense<0.000000e+00> : vector<16xf32>
      %40 = vector.multi_reduction <add>, %39, %cst_19 [0] : vector<32x16xf32> to vector<16xf32>
      %41 = vector.shape_cast %40 : vector<16xf32> to vector<1x16xf32>
      %cst_20 = arith.constant 1.000000e-24 : f32
      %42 = vector.broadcast %cst_20 : f32 to vector<1x16xf32>
      %43 = arith.maximumf %41, %42 : vector<1x16xf32>
      %44 = math.rsqrt %43 : vector<1x16xf32>
      %45 = vector.broadcast %44 : vector<1x16xf32> to vector<32x16xf32>
      %46 = arith.mulf %38, %45 : vector<32x16xf32>
      %c0_21 = arith.constant 0 : index
      %c0_22 = arith.constant 0 : index
      %47 = vector.load %arg6[%c0_21, %c0_22] : memref<32x16xf32, #tpu.memory_space<vmem>>, vector<32x16xf32>
      tpu.vector_store %arg6[%c0_21, %c0_22], %46 {strides = array<i32>} : memref<32x16xf32, #tpu.memory_space<vmem>>, vector<32x16xf32>,
    } else {
    }
    %c0 = arith.constant 0 : index
    %c0_1 = arith.constant 0 : index
    %3 = vector.load %arg2[%c0, %c0_1] : memref<8x32xf32, #tpu.memory_space<vmem>>, vector<8x32xf32>
    %c0_2 = arith.constant 0 : index
    %c0_3 = arith.constant 0 : index
    %4 = vector.load %arg6[%c0_2, %c0_3] : memref<32x16xf32, #tpu.memory_space<vmem>>, vector<32x16xf32>
    %cst = arith.constant dense<0.000000e+00> : vector<8x16xf32>
    %5 = tpu.matmul %3, %4, %cst {dimension_numbers = #tpu.dot_dimension_numbers<[1], [0], [0], [1], [0, 0, 1, 1], [], []>} : vector<8x32xf32>, vector<32x16xf32>, vector<8x16xf32> -> vector<8x16xf32>
    %6 = arith.mulf %5, %5 : vector<8x16xf32>
    %cst_4 = arith.constant 1.000000e+00 : f32
    %7 = vector.broadcast %cst_4 : f32 to vector<8x16xf32>
    %8 = arith.subf %7, %6 : vector<8x16xf32>
    %cst_5 = arith.constant 0.000000e+00 : f32
    %9 = vector.broadcast %cst_5 : f32 to vector<8x16xf32>
    %10 = arith.maximumf %9, %8 : vector<8x16xf32>
    %11 = math.sqrt %10 : vector<8x16xf32>
    %cst_6 = arith.constant 0.87758255 : f32
    %12 = vector.broadcast %cst_6 : f32 to vector<8x16xf32>
    %13 = arith.mulf %5, %12 : vector<8x16xf32>
    %cst_7 = arith.constant 0.47942555 : f32
    %14 = vector.broadcast %cst_7 : f32 to vector<8x16xf32>
    %15 = arith.mulf %11, %14 : vector<8x16xf32>
    %16 = arith.subf %13, %15 : vector<8x16xf32>
    %cst_8 = arith.constant -0.87758255 : f32
    %17 = vector.broadcast %cst_8 : f32 to vector<8x16xf32>
    %18 = arith.cmpf ogt, %5, %17 : vector<8x16xf32>
    %cst_9 = arith.constant 0.239712775 : f32
    %19 = vector.broadcast %cst_9 : f32 to vector<8x16xf32>
    %20 = arith.subf %5, %19 : vector<8x16xf32>
    %21 = arith.select %18, %16, %20 : vector<8x16xi1>, vector<8x16xf32>
    %c0_10 = arith.constant 0 : index
    %c0_11 = arith.constant 0 : index
    %22 = vector.load %arg4[%c0_10, %c0_11] : memref<8x1xi32, #tpu.memory_space<vmem>>, vector<8x1xi32>
    %c16_i32 = arith.constant 16 : i32
    %23 = arith.muli %arg0, %c16_i32 : i32
    %24 = vector.broadcast %23 : i32 to vector<8x1xi32>
    %25 = arith.subi %22, %24 : vector<8x1xi32>
    %26 = tpu.iota {dimensions = array<i32: 1>} : vector<8x16xi32>
    %27 = vector.broadcast %25 : vector<8x1xi32> to vector<8x16xi32>
    %28 = arith.cmpi eq, %26, %27 : vector<8x16xi32>
    %cst_12 = arith.constant 9.062500e-01 : f32
    %cst_13 = arith.constant 6.250000e-03 : f32
    %29 = vector.broadcast %cst_12 : f32 to vector<8x16xf32>
    %30 = vector.broadcast %cst_13 : f32 to vector<8x16xf32>
    %31 = arith.select %28, %29, %30 : vector<8x16xi1>, vector<8x16xf32>
    %32 = arith.subf %21, %5 : vector<8x16xf32>
    %33 = arith.mulf %31, %32 : vector<8x16xf32>
    %34 = arith.addf %5, %33 : vector<8x16xf32>
    %cst_14 = arith.constant 3.000000e+01 : f32
    %35 = vector.broadcast %cst_14 : f32 to vector<8x16xf32>
    %36 = arith.mulf %34, %35 : vector<8x16xf32>
    %c0_15 = arith.constant 0 : index
    %c0_16 = arith.constant 0 : index
    %37 = vector.load %arg5[%c0_15, %c0_16] : memref<8x16xf32, #tpu.memory_space<vmem>>, vector<8x16xf32>
    tpu.vector_store %arg5[%c0_15, %c0_16], %36 {strides = array<i32>} : memref<8x16xf32, #tpu.memory_space<vmem>>, vector<8x16xf32>,
    return
  }
  func.func @transform_0(%arg0: i32, %arg1: i32) -> (i32, i32) {
    %c0_i32 = arith.constant 0 : i32
    %c0_i32_0 = arith.constant 0 : i32
    return %arg1, %c0_i32 : i32, i32
  }
  func.func @transform_1(%arg0: i32, %arg1: i32) -> (i32, i32) {
    %c0_i32 = arith.constant 0 : i32
    %c0_i32_0 = arith.constant 0 : i32
    return %c0_i32, %arg0 : i32, i32
  }
  func.func @transform_2(%arg0: i32, %arg1: i32) -> (i32, i32) {
    %c0_i32 = arith.constant 0 : i32
    %c0_i32_0 = arith.constant 0 : i32
    return %arg1, %c0_i32 : i32, i32
  }
  func.func @transform_3(%arg0: i32, %arg1: i32) -> (i32, i32) {
    %c0_i32 = arith.constant 0 : i32
    return %arg1, %arg0 : i32, i32
  }
}

</mosaic_0001>

<bundles_post_ra>
// kernel: tpu_custom_call.1
= control target key start
LH: loop header
LB: loop body
LE: loop exit
PB: predicated region body
PF: predicated region fallthrough
CT: control target
= control target key end

     0   :  { %vm27_vm0 = vcmask 130048   ;;  %s232_s0 = inlined_call_operand.vmem [shape: f32[8,32], index: 0, kind: input, shape index: {}]   ;;  %s233_s1 = inlined_call_operand.vmem [shape: f32[32,16], index: 1, kind: input, shape index: {}]   ;;  %s234_s2 = inlined_call_operand.vmem [shape: s32[8,1], index: 2, kind: input, shape index: {}]   ;;  %s235_s3 = inlined_call_operand.hbm [shape: f32[8,16], index: 3, kind: output, shape index: {}]  }
   0x1   :  { %v19_v0 = vld [vmem:[%s233_s1] sm:$0xff]  ;;  %v20_v1 = vld [vmem:[%s233_s1 + $0x8] sm:$0xff]  ;;  %v21_v2 = vld [vmem:[%s233_s1 + $0x10] sm:$0xff] }
   0x2   :  { %v22_v3 = vld [vmem:[%s233_s1 + $0x18] sm:$0xff]  ;;  %v23_v4 = vmul.f32 %v19_v0, %v19_v0  ;;  %v24_v5 = vmul.f32 %v20_v1, %v20_v1  ;;  %v25_v6 = vmul.f32 %v21_v2, %v21_v2 }
   0x3   :  { %8 = vsyncpa [#allocation4], 0  ;;  %v26_v7 = vmul.f32 %v22_v3, %v22_v3  ;;  %v110_v22 = vld [vmem:[%s234_s2] sm:$0xff]  ;;  %v179_v23 = vmov 0   ;;  %vm65_vm4 = vcmask 261120   ;;  %v114_v49 = vlaneseq  ;;  %s134_s25 = sshll.u32 %s235_s3, 4  ;;  %s135_s25 = int_to_ptr.hbm [resolvable:$true] %s134_s25 }
   0x4   :  { %v28_v8 = vsel %vm27_vm0, %v23_v4, 0.0  ;;  %v29_v9 = vsel %vm27_vm0, %v24_v5, 0.0  ;;  %v31_v10 = vsel %vm27_vm0, %v25_v6, 0.0  ;;  %148 = vset.pattern.permute.xlu0 %v179_v23  ;;  %v60_v39 = vld [vmem:[%s232_s0] sm:$0xff]  ;;  %v180_v62 = vmov 0.00625  }
   0x5   :  { %v30_v11 = vadd.f32 %v29_v9, %v28_v8  ;;  %v33_v12 = vsel %vm27_vm0, %v26_v7, 0.0  ;;  %117 = vperm.xlu0 %148, %v110_v22   ;;  %v115_v52 = vand.u32 127, %v114_v49  ;;  %s181_s0 = smov [#allocation3]  }
   0x6   :  { %s132_s22 = sshll.u32 %s181_s0, 4  ;;  %s133_s22 = int_to_ptr.vmem [resolvable:$true] %s132_s22 }
   0x7   :  { %v32_v13 = vadd.f32 %v31_v10, %v30_v11 }
   0x9   :  { %v34_v14 = vadd.f32 %v33_v12, %v32_v13 }
   0xb   :  { %v35_v15 = vrot.slane %v34_v14, 4 }
   0xd   :  { %v36_v16 = vadd.f32 %v35_v15, %v34_v14 }
   0xf   :  { %v37_v17 = vrot.slane %v36_v16, 2 }
  0x11   :  { %v38_v18 = vadd.f32 %v37_v17, %v36_v16 }
  0x13   :  { %v39_v19 = vrot.slane %v38_v18, 1 }
  0x15   :  { %v40_v20 = vadd.f32 %v39_v19, %v38_v18 }
  0x17   :  { %v41_v21 = vmax.f32 %v40_v20, 1e-24 }
  0x19   :  { %149 = vrsqrt.f32 %v41_v21  ;;  %vm48_vm1 = vweird.f32 %v41_v21 }
  0x1f   :  { %v150_v24 = vpop.eup %149 }
  0x20   :  { %v43_v25 = vmul.f32 %v150_v24, %v41_v21  ;;  %vm49_vm2 = vweird.f32 %v150_v24 }
  0x21   :  { %vm50_vm3 = vmor %vm48_vm1, %vm49_vm2 }
  0x22   :  { %v44_v26 = vmul.f32 %v150_v24, %v43_v25 }
  0x24   :  { %v45_v27 = vmul.f32 0.5, %v44_v26 }
  0x26   :  { %v46_v28 = vsub.f32 1.5, %v45_v27 }
  0x28   :  { %v47_v29 = vmul.f32 %v150_v24, %v46_v28 }
  0x2a   :  { %v51_v30 = vsel %vm50_vm3, %v150_v24, %v47_v29 }
  0x2b   :  { %v55_v31 = vmul.f32 %v51_v30, %v22_v3  ;;  %v54_v32 = vmul.f32 %v51_v30, %v21_v2  ;;  %v53_v33 = vmul.f32 %v51_v30, %v20_v1  ;;  %v52_v34 = vmul.f32 %v51_v30, %v19_v0 }
  0x2d   :  { %59 = vst.msk [vmem:[#allocation2 + $0x18] sm:$0xff] %vm27_vm0, %v55_v31 }
  0x2e   :  { %58 = vst.msk [vmem:[#allocation2 + $0x10] sm:$0xff] %vm27_vm0, %v54_v32 }
  0x2f   :  { %57 = vst.msk [vmem:[#allocation2 + $0x8] sm:$0xff] %vm27_vm0, %v53_v33 }
  0x30   :  { %56 = vst.msk [vmem:[#allocation2] sm:$0xff] %vm27_vm0, %v52_v34 }
  0x34   :  { %v64_v35 = vld [vmem:[#allocation2 + $0x18] sm:$0xff] }
  0x35   :  { %81 = vmatpush.msra.mxu0 %v64_v35  ;;  %v63_v36 = vld [vmem:[#allocation2 + $0x10] sm:$0xff] }
  0x36   :  { %v62_v37 = vld [vmem:[#allocation2 + $0x8] sm:$0xff] }
  0x37   :  { %82 = vmatpush.msra.mxu0 %v63_v36  ;;  %v61_v38 = vld [vmem:[#allocation2] sm:$0xff] }
  0x39   :  { %83 = vmatpush.msra.mxu0 %v62_v37 }
  0x3b   :  { %84 = vmatpush.msra.mxu0 %v61_v38 }
  0x3c   :  { %143 = vmatmul.msk.f32.vlgmr.msra.gmra.mxu0 %vm65_vm4, %v60_v39 }
  0x77   :  { %v118_v54 = vpop.permute.xlu0 %117 }
  0x78   :  { %vm119_vm7 = vcmp.eq.s32.totalorder %v115_v52, %v118_v54 }
  0x79   :  { %v120_v63 = vsel %vm119_vm7, 0.90625, %v180_v62 }
  0xb9   :  { %v86_v40 = vpop.f32.mrf.mxu0 }
  0xba   :  { %v89_v41 = vmul.f32 %v86_v40, %v86_v40  ;;  %v104_v57 = vmul.f32 0.87758255, %v86_v40  ;;  %v144_v59 = vadd.f32 -0.23971277, %v86_v40  ;;  %vm107_vm8 = vcmp.gt.f32.partialorder %v86_v40, -0.87758255 }
  0xbc   :  { %v90_v42 = vsub.f32 1.0, %v89_v41 }
  0xbe   :  { %v91_v43 = vmax.f32 %v90_v42, 0.0 }
  0xc0   :  { %151 = vrsqrt.f32 %v91_v43  ;;  %vm99_vm5 = vcmp.eq.f32.partialorder %v91_v43, inf  ;;  %v102_v53 = vand.u32 2147483648, %v91_v43  ;;  %vm101_vm6 = vcmp.eq.f32.partialorder %v91_v43, 0.0 }
  0xc6   :  { %v152_v44 = vpop.eup %151 }
  0xc7   :  { %v93_v45 = vmul.f32 %v152_v44, %v91_v43 }
  0xc9   :  { %v94_v46 = vmul.f32 %v152_v44, %v93_v45 }
  0xcb   :  { %v95_v47 = vmul.f32 0.5, %v94_v46 }
  0xcd   :  { %v96_v48 = vsub.f32 1.5, %v95_v47 }
  0xcf   :  { %v97_v50 = vmul.f32 %v152_v44, %v96_v48 }
  0xd1   :  { %v98_v51 = vmul.f32 %v97_v50, %v91_v43 }
  0xd3   :  { %v100_v55 = vsel %vm99_vm5, %v91_v43, %v98_v51 }
  0xd4   :  { %v103_v56 = vsel %vm101_vm6, %v102_v53, %v100_v55 }
  0xd5   :  { %v105_v58 = vmul.f32 0.47942555, %v103_v56 }
  0xd7   :  { %v106_v60 = vsub.f32 %v104_v57, %v105_v58 }
  0xd9   :  { %v109_v61 = vsel %vm107_vm8, %v106_v60, %v144_v59 }
  0xda   :  { %v121_v0 = vsub.f32 %v109_v61, %v86_v40 }
  0xdc   :  { %v122_v1 = vmul.f32 %v121_v0, %v120_v63 }
  0xde   :  { %v123_v2 = vadd.f32 %v122_v1, %v86_v40 }
  0xe0   :  { %v124_v3 = vmul.f32 30.0, %v123_v2 }
  0xe2   :  { %126 = vst.msk [vmem:[#allocation3] sm:$0xff] %vm27_vm0, %v124_v3 }
  0xe3   :  { %137 = dma.vmem_to_hbm [thread:$0]  %s133_s22, 128, %s135_s25, [#allocation4]  }
  0xe4   :  { %177 = dma.done.wait [#allocation4], 128  }
  0xe5   :  { %178 = vsyncadd [#allocation4], 4294967168 }
  0xe6   :  { %142 = vsyncpa [#allocation4], 1 }

</bundles_post_ra>
